<compile_context>
chip_gen: v7x
topology: tpu7x:2x2x1
jax: 0.10.0
libtpu: 0.0.40
codegen_flags: <defaults>
</compile_context>

<pallas_src>
import functools
import math

import jax
import jax.numpy as jnp
from jax.experimental import pallas as pl
from jax.experimental.pallas import tpu as pltpu


def _round_up(x, m):
    return ((x + m - 1) // m) * m


def _coupling_kernel(x_ref, sldj_ref, w1t_ref, b1_ref, w2st_ref, b2s_ref,
                     w2tt_ref, b2t_ref, rs_ref, x_out_ref, sldj_out_ref,
                     *, half, reverse_mask):
    # x_ref: (D, TILE_M) -- tokens on lanes, features on sublanes.
    # chunk(2, dim=feature) == sublane split at a multiple-of-8 offset (free).
    if reverse_mask:
        x_id = x_ref[:half, :]
        x_change = x_ref[half:, :]
    else:
        x_change = x_ref[:half, :]
        x_id = x_ref[half:, :]

    # st-net first Linear (as W1^T @ x_id) + LeakyReLU(0.01), accumulate in f32.
    h = jnp.dot(w1t_ref[...], x_id, preferred_element_type=jnp.float32) + b1_ref[...]
    h = jnp.where(h >= 0, h, 0.01 * h)                 # nn.LeakyReLU default slope
    h = h.astype(w2st_ref.dtype)                       # bf16 feed for second matmul

    # Second Linear, pre-split into s / t halves (no lane/sublane slicing here).
    s = jnp.dot(w2st_ref[...], h, preferred_element_type=jnp.float32) + b2s_ref[...]
    t = jnp.dot(w2tt_ref[...], h, preferred_element_type=jnp.float32) + b2t_ref[...]

    # s = rescale(tanh(s));  forward coupling: x_change = (x_change + t) * exp(s)
    s = jnp.tanh(s) * rs_ref[...]                      # (half, TILE_M), f32
    # TODO(synk): reverse=True inverse path (x_change * exp(-s) - t) not emitted here.
    # TODO(synk): torch.isnan(exp_s).any() runtime RuntimeError has no in-kernel equivalent.
    exp_s = jnp.exp(s)
    x_change_new = (x_change.astype(jnp.float32) + t) * exp_s

    # cat(dim=feature) == write the two sublane halves of the output slab.
    if reverse_mask:
        x_out_ref[:half, :] = x_id.astype(x_out_ref.dtype)
        x_out_ref[half:, :] = x_change_new.astype(x_out_ref.dtype)
    else:
        x_out_ref[:half, :] = x_change_new.astype(x_out_ref.dtype)
        x_out_ref[half:, :] = x_id.astype(x_out_ref.dtype)

    # sldj += s.sum(feature): cross-sublane reduce -> lane-dense (1, TILE_M) row.
    sldj_out_ref[...] = sldj_ref[...] + jnp.sum(s, axis=0, keepdims=True)


def coupling_layer_forward(x, sldj, w1, b1, w2, b2, rescale_w, *,
                           reverse_mask, tile_m=512):
    B, S, D = x.shape
    half = D // 2
    H = w1.shape[1]
    assert w1.shape == (half, H) and w2.shape == (H, D)
    assert b1.shape == (H,) and b2.shape == (D,) and rescale_w.shape == (half,)

    M = B * S
    tile = min(tile_m, _round_up(M, 128))       # lane-dense tile, multiple of 128
    Mp = _round_up(M, tile)
    n_tiles = Mp // tile                        # v7x: ideally even & >= 4 for 2 TCs

    mm_dtype = jnp.bfloat16 if x.dtype == jnp.bfloat16 else jnp.float32

    # --- wrapper-side layout plumbing (one-time XLA ops, not on the hot path) ---
    xt = x.reshape(M, D).T                       # (D, M): tokens -> lanes
    sldj_row = sldj.reshape(1, M).astype(jnp.float32)
    if Mp != M:
        xt = jnp.pad(xt, ((0, 0), (0, Mp - M)))
        sldj_row = jnp.pad(sldj_row, ((0, 0), (0, Mp - M)))

    w1t = w1.T.astype(mm_dtype)                  # (H, half)
    b1c = b1.reshape(H, 1).astype(jnp.float32)
    w2st = w2[:, :half].T.astype(mm_dtype)       # (half, H)  -> s
    w2tt = w2[:, half:].T.astype(mm_dtype)       # (half, H)  -> t
    b2s = b2[:half].reshape(half, 1).astype(jnp.float32)
    b2t = b2[half:].reshape(half, 1).astype(jnp.float32)
    rs = rescale_w.reshape(half, 1).astype(jnp.float32)

    kernel = functools.partial(_coupling_kernel, half=half, reverse_mask=reverse_mask)

    itemsize = jnp.dtype(x.dtype).itemsize
    flops = 2 * M * (half * H + H * D)
    transcendentals = 2 * M * half               # tanh + exp
    bytes_accessed = (2 * M * D * itemsize + 2 * M * 4
                      + (half * H + H * D) * jnp.dtype(mm_dtype).itemsize
                      + (H + D + half) * 4)

    x_out_t, sldj_out = pl.pallas_call(
        kernel,
        out_shape=(
            jax.ShapeDtypeStruct((D, Mp), x.dtype),
            jax.ShapeDtypeStruct((1, Mp), jnp.float32),
        ),
        grid_spec=pltpu.PrefetchScalarGridSpec(
            num_scalar_prefetch=0,
            grid=(n_tiles,),
            in_specs=[
                pl.BlockSpec((D, tile), lambda m: (0, m)),     # x (transposed)
                pl.BlockSpec((1, tile), lambda m: (0, m)),     # sldj (row)
                # Weight/bias blocks: grid-invariant index_maps -> VMEM-resident.
                pl.BlockSpec((H, half), lambda m: (0, 0)),     # w1^T
                pl.BlockSpec((H, 1), lambda m: (0, 0)),        # b1
                pl.BlockSpec((half, H), lambda m: (0, 0)),     # w2_s^T
                pl.BlockSpec((half, 1), lambda m: (0, 0)),     # b2_s
                pl.BlockSpec((half, H), lambda m: (0, 0)),     # w2_t^T
                pl.BlockSpec((half, 1), lambda m: (0, 0)),     # b2_t
                pl.BlockSpec((half, 1), lambda m: (0, 0)),     # rescale weight
            ],
            out_specs=[
                pl.BlockSpec((D, tile), lambda m: (0, m)),
                pl.BlockSpec((1, tile), lambda m: (0, m)),
            ],
        ),
        compiler_params=pltpu.CompilerParams(
            dimension_semantics=("parallel",),
        ),
        cost_estimate=pl.CostEstimate(
            flops=flops, transcendentals=transcendentals,
            bytes_accessed=bytes_accessed),
    )(xt, sldj_row, w1t, b1c, w2st, b2s, w2tt, b2t, rs)

    x_new = x_out_t[:, :M].T.reshape(B, S, D)
    sldj_new = sldj_out[0, :M].reshape(B, S)
    return x_new, sldj_new


def _reference(x, sldj, w1, b1, w2, b2, rescale_w, *, reverse_mask):
    """Pure-JAX mirror of CouplingLayer.forward (reverse=False)."""
    half = x.shape[-1] // 2
    if reverse_mask:
        x_id, x_change = x[..., :half], x[..., half:]
    else:
        x_change, x_id = x[..., :half], x[..., half:]
    h = x_id @ w1 + b1
    h = jnp.where(h >= 0, h, 0.01 * h)
    st = h @ w2 + b2
    s = jnp.tanh(st[..., :half]) * rescale_w
    t = st[..., half:]
    x_change = (x_change + t) * jnp.exp(s)
    sldj = sldj + jnp.sum(s, axis=-1)
    if reverse_mask:
        x_new = jnp.concatenate([x_id, x_change], axis=-1)
    else:
        x_new = jnp.concatenate([x_change, x_id], axis=-1)
    return x_new, sldj


if __name__ == "__main__":
    # Module config: latent_dim=32, hidden_dims=[32].
    latent_dim, hidden = 32, 32
    half = latent_dim // 2

    key = jax.random.PRNGKey(0)
    ks = jax.random.split(key, 8)

    def linear_params(kw, kb, fan_in, fan_out):
        bound = 1.0 / math.sqrt(fan_in)
        w = jax.random.uniform(kw, (fan_in, fan_out), jnp.float32,
                               minval=-bound, maxval=bound)
        b = jax.random.uniform(kb, (fan_out,), jnp.float32,
                               minval=-bound, maxval=bound)
        return w, b

    w1, b1 = linear_params(ks[2], ks[3], half, hidden)
    w2, b2 = linear_params(ks[4], ks[5], hidden, latent_dim)

    # weight_norm(Rescale(half)) effective weight: g * v / |v| (elementwise, dim=0).
    v = jax.random.normal(ks[6], (half,), jnp.float32) + 1.5
    g = jnp.abs(jax.random.normal(ks[7], (half,), jnp.float32)) + 0.5
    rescale_w = g * v / jnp.abs(v)

    # f32 path: tiny shape (exercises pad-to-128) and multi-tile shape.
    for (B, S) in ((2, 8), (4, 256)):
        kx = jax.random.fold_in(ks[0], B * 1000 + S)
        ksl = jax.random.fold_in(ks[1], B * 1000 + S)
        x = jax.random.normal(kx, (B, S, latent_dim), jnp.float32)
        sldj = jax.random.normal(ksl, (B, S), jnp.float32)
        for reverse_mask in (False, True):
            x_out, sldj_out = coupling_layer_forward(
                x, sldj, w1, b1, w2, b2, rescale_w, reverse_mask=reverse_mask)
            x_out = jax.block_until_ready(x_out)
            sldj_out = jax.block_until_ready(sldj_out)

            ref_x, ref_sldj = _reference(
                x, sldj, w1, b1, w2, b2, rescale_w, reverse_mask=reverse_mask)

            assert x_out.shape == (B, S, latent_dim)
            assert sldj_out.shape == (B, S)
            assert jnp.allclose(x_out, ref_x, atol=1e-4, rtol=1e-4)
            assert jnp.allclose(sldj_out, ref_sldj, atol=1e-4, rtol=1e-4)

    # bf16 path (v6e/v7x bandwidth win): dtype-preserving, elementwise stays f32.
    B, S = 4, 256
    x = jax.random.normal(ks[0], (B, S, latent_dim), jnp.float32)
    sldj = jax.random.normal(ks[1], (B, S), jnp.float32)
    x_bf = x.astype(jnp.bfloat16)
    x_out, sldj_out = coupling_layer_forward(
        x_bf, sldj, w1, b1, w2, b2, rescale_w, reverse_mask=False)
    x_out = jax.block_until_ready(x_out)
    sldj_out = jax.block_until_ready(sldj_out)
    ref_x, ref_sldj = _reference(
        x_bf.astype(jnp.float32), sldj, w1, b1, w2, b2, rescale_w, reverse_mask=False)
    assert x_out.dtype == jnp.bfloat16
    assert jnp.allclose(x_out.astype(jnp.float32), ref_x, atol=0.1, rtol=0.1)
    assert jnp.allclose(sldj_out, ref_sldj, atol=0.1, rtol=0.1)

    print("KERNEL_OK")
</pallas_src>

<mosaic_0001>
module attributes {stable_mosaic.version = 11 : i64} {
  func.func @_coupling_kernel(%arg0: i32, %arg1: memref<32x128xf32, #tpu.memory_space<vmem>>, %arg2: memref<1x128xf32, #tpu.memory_space<vmem>>, %arg3: memref<32x16xf32, #tpu.memory_space<vmem>>, %arg4: memref<32x1xf32, #tpu.memory_space<vmem>>, %arg5: memref<16x32xf32, #tpu.memory_space<vmem>>, %arg6: memref<16x1xf32, #tpu.memory_space<vmem>>, %arg7: memref<16x32xf32, #tpu.memory_space<vmem>>, %arg8: memref<16x1xf32, #tpu.memory_space<vmem>>, %arg9: memref<16x1xf32, #tpu.memory_space<vmem>>, %arg10: memref<32x128xf32, #tpu.memory_space<vmem>>, %arg11: memref<1x128xf32, #tpu.memory_space<vmem>>) attributes {dimension_semantics = [#tpu.dimension_semantics<parallel>], iteration_bounds = array<i64: 1>, scalar_prefetch = 0 : i64, scratch_operands = 0 : i64, tpu.core_type = #tpu.core_type<tc>, window_params = [{transform_indices = @transform_0, window_bounds = array<i64: 32, 128>}, {transform_indices = @transform_1, window_bounds = array<i64: 1, 128>}, {pipeline_mode = #tpu.pipeline_mode<synchronous>, transform_indices = @transform_2, window_bounds = array<i64: 32, 16>}, {pipeline_mode = #tpu.pipeline_mode<synchronous>, transform_indices = @transform_3, window_bounds = array<i64: 32, 1>}, {pipeline_mode = #tpu.pipeline_mode<synchronous>, transform_indices = @transform_4, window_bounds = array<i64: 16, 32>}, {pipeline_mode = #tpu.pipeline_mode<synchronous>, transform_indices = @transform_5, window_bounds = array<i64: 16, 1>}, {pipeline_mode = #tpu.pipeline_mode<synchronous>, transform_indices = @transform_6, window_bounds = array<i64: 16, 32>}, {pipeline_mode = #tpu.pipeline_mode<synchronous>, transform_indices = @transform_7, window_bounds = array<i64: 16, 1>}, {pipeline_mode = #tpu.pipeline_mode<synchronous>, transform_indices = @transform_8, window_bounds = array<i64: 16, 1>}, {transform_indices = @transform_9, window_bounds = array<i64: 32, 128>}, {transform_indices = @transform_10, window_bounds = array<i64: 1, 128>}]} {
    %c0 = arith.constant 0 : index
    %c0_0 = arith.constant 0 : index
    %0 = vector.load %arg1[%c0, %c0_0] : memref<32x128xf32, #tpu.memory_space<vmem>>, vector<16x128xf32>
    %c16 = arith.constant 16 : index
    %c0_1 = arith.constant 0 : index
    %1 = vector.load %arg1[%c16, %c0_1] : memref<32x128xf32, #tpu.memory_space<vmem>>, vector<16x128xf32>
    %c0_2 = arith.constant 0 : index
    %c0_3 = arith.constant 0 : index
    %2 = vector.load %arg3[%c0_2, %c0_3] : memref<32x16xf32, #tpu.memory_space<vmem>>, vector<32x16xf32>
    %cst = arith.constant dense<0.000000e+00> : vector<32x128xf32>
    %3 = tpu.matmul %2, %1, %cst {dimension_numbers = #tpu.dot_dimension_numbers<[1], [0], [0], [1], [0, 0, 1, 1], [], []>} : vector<32x16xf32>, vector<16x128xf32>, vector<32x128xf32> -> vector<32x128xf32>
    %c0_4 = arith.constant 0 : index
    %c0_5 = arith.constant 0 : index
    %4 = vector.load %arg4[%c0_4, %c0_5] : memref<32x1xf32, #tpu.memory_space<vmem>>, vector<32x1xf32>
    %5 = vector.broadcast %4 : vector<32x1xf32> to vector<32x128xf32>
    %6 = arith.addf %3, %5 : vector<32x128xf32>
    %cst_6 = arith.constant 0.000000e+00 : f32
    %7 = vector.broadcast %cst_6 : f32 to vector<32x128xf32>
    %8 = arith.cmpf oge, %6, %7 : vector<32x128xf32>
    %cst_7 = arith.constant 0.00999999977 : f32
    %9 = vector.broadcast %cst_7 : f32 to vector<32x128xf32>
    %10 = arith.mulf %9, %6 : vector<32x128xf32>
    %11 = arith.select %8, %6, %10 : vector<32x128xi1>, vector<32x128xf32>
    %c0_8 = arith.constant 0 : index
    %c0_9 = arith.constant 0 : index
    %12 = vector.load %arg5[%c0_8, %c0_9] : memref<16x32xf32, #tpu.memory_space<vmem>>, vector<16x32xf32>
    %cst_10 = arith.constant dense<0.000000e+00> : vector<16x128xf32>
    %13 = tpu.matmul %12, %11, %cst_10 {dimension_numbers = #tpu.dot_dimension_numbers<[1], [0], [0], [1], [0, 0, 1, 1], [], []>} : vector<16x32xf32>, vector<32x128xf32>, vector<16x128xf32> -> vector<16x128xf32>
    %c0_11 = arith.constant 0 : index
    %c0_12 = arith.constant 0 : index
    %14 = vector.load %arg6[%c0_11, %c0_12] : memref<16x1xf32, #tpu.memory_space<vmem>>, vector<16x1xf32>
    %15 = vector.broadcast %14 : vector<16x1xf32> to vector<16x128xf32>
    %16 = arith.addf %13, %15 : vector<16x128xf32>
    %c0_13 = arith.constant 0 : index
    %c0_14 = arith.constant 0 : index
    %17 = vector.load %arg7[%c0_13, %c0_14] : memref<16x32xf32, #tpu.memory_space<vmem>>, vector<16x32xf32>
    %cst_15 = arith.constant dense<0.000000e+00> : vector<16x128xf32>
    %18 = tpu.matmul %17, %11, %cst_15 {dimension_numbers = #tpu.dot_dimension_numbers<[1], [0], [0], [1], [0, 0, 1, 1], [], []>} : vector<16x32xf32>, vector<32x128xf32>, vector<16x128xf32> -> vector<16x128xf32>
    %c0_16 = arith.constant 0 : index
    %c0_17 = arith.constant 0 : index
    %19 = vector.load %arg8[%c0_16, %c0_17] : memref<16x1xf32, #tpu.memory_space<vmem>>, vector<16x1xf32>
    %20 = vector.broadcast %19 : vector<16x1xf32> to vector<16x128xf32>
    %21 = arith.addf %18, %20 : vector<16x128xf32>
    %22 = math.tanh %16 : vector<16x128xf32>
    %c0_18 = arith.constant 0 : index
    %c0_19 = arith.constant 0 : index
    %23 = vector.load %arg9[%c0_18, %c0_19] : memref<16x1xf32, #tpu.memory_space<vmem>>, vector<16x1xf32>
    %24 = vector.broadcast %23 : vector<16x1xf32> to vector<16x128xf32>
    %25 = arith.mulf %22, %24 : vector<16x128xf32>
    %26 = math.exp %25 : vector<16x128xf32>
    %27 = arith.addf %0, %21 : vector<16x128xf32>
    %28 = arith.mulf %27, %26 : vector<16x128xf32>
    %c0_20 = arith.constant 0 : index
    %c0_21 = arith.constant 0 : index
    %29 = vector.load %arg10[%c0_20, %c0_21] : memref<32x128xf32, #tpu.memory_space<vmem>>, vector<16x128xf32>
    tpu.vector_store %arg10[%c0_20, %c0_21], %28 {strides = array<i32>} : memref<32x128xf32, #tpu.memory_space<vmem>>, vector<16x128xf32>,
    %c16_22 = arith.constant 16 : index
    %c0_23 = arith.constant 0 : index
    %30 = vector.load %arg10[%c16_22, %c0_23] : memref<32x128xf32, #tpu.memory_space<vmem>>, vector<16x128xf32>
    tpu.vector_store %arg10[%c16_22, %c0_23], %1 {strides = array<i32>} : memref<32x128xf32, #tpu.memory_space<vmem>>, vector<16x128xf32>,
    %c0_24 = arith.constant 0 : index
    %c0_25 = arith.constant 0 : index
    %31 = vector.load %arg2[%c0_24, %c0_25] : memref<1x128xf32, #tpu.memory_space<vmem>>, vector<1x128xf32>
    %cst_26 = arith.constant dense<0.000000e+00> : vector<128xf32>
    %32 = vector.multi_reduction <add>, %25, %cst_26 [0] : vector<16x128xf32> to vector<128xf32>
    %33 = vector.shape_cast %32 : vector<128xf32> to vector<1x128xf32>
    %34 = arith.addf %31, %33 : vector<1x128xf32>
    %c0_27 = arith.constant 0 : index
    %c0_28 = arith.constant 0 : index
    %35 = vector.load %arg11[%c0_27, %c0_28] : memref<1x128xf32, #tpu.memory_space<vmem>>, vector<1x128xf32>
    tpu.vector_store %arg11[%c0_27, %c0_28], %34 {strides = array<i32>} : memref<1x128xf32, #tpu.memory_space<vmem>>, vector<1x128xf32>,
    return
  }
  func.func @transform_0(%arg0: i32) -> (i32, i32) {
    %c0_i32 = arith.constant 0 : i32
    %c0_i32_0 = arith.constant 0 : i32
    return %c0_i32, %arg0 : i32, i32
  }
  func.func @transform_1(%arg0: i32) -> (i32, i32) {
    %c0_i32 = arith.constant 0 : i32
    %c0_i32_0 = arith.constant 0 : i32
    return %c0_i32, %arg0 : i32, i32
  }
  func.func @transform_2(%arg0: i32) -> (i32, i32) {
    %c0_i32 = arith.constant 0 : i32
    %c0_i32_0 = arith.constant 0 : i32
    %c0_i32_1 = arith.constant 0 : i32
    return %c0_i32, %c0_i32_0 : i32, i32
  }
  func.func @transform_3(%arg0: i32) -> (i32, i32) {
    %c0_i32 = arith.constant 0 : i32
    %c0_i32_0 = arith.constant 0 : i32
    %c0_i32_1 = arith.constant 0 : i32
    return %c0_i32, %c0_i32_0 : i32, i32
  }
  func.func @transform_4(%arg0: i32) -> (i32, i32) {
    %c0_i32 = arith.constant 0 : i32
    %c0_i32_0 = arith.constant 0 : i32
    %c0_i32_1 = arith.constant 0 : i32
    return %c0_i32, %c0_i32_0 : i32, i32
  }
  func.func @transform_5(%arg0: i32) -> (i32, i32) {
    %c0_i32 = arith.constant 0 : i32
    %c0_i32_0 = arith.constant 0 : i32
    %c0_i32_1 = arith.constant 0 : i32
    return %c0_i32, %c0_i32_0 : i32, i32
  }
  func.func @transform_6(%arg0: i32) -> (i32, i32) {
    %c0_i32 = arith.constant 0 : i32
    %c0_i32_0 = arith.constant 0 : i32
    %c0_i32_1 = arith.constant 0 : i32
    return %c0_i32, %c0_i32_0 : i32, i32
  }
  func.func @transform_7(%arg0: i32) -> (i32, i32) {
    %c0_i32 = arith.constant 0 : i32
    %c0_i32_0 = arith.constant 0 : i32
    %c0_i32_1 = arith.constant 0 : i32
    return %c0_i32, %c0_i32_0 : i32, i32
  }
  func.func @transform_8(%arg0: i32) -> (i32, i32) {
    %c0_i32 = arith.constant 0 : i32
    %c0_i32_0 = arith.constant 0 : i32
    %c0_i32_1 = arith.constant 0 : i32
    return %c0_i32, %c0_i32_0 : i32, i32
  }
  func.func @transform_9(%arg0: i32) -> (i32, i32) {
    %c0_i32 = arith.constant 0 : i32
    %c0_i32_0 = arith.constant 0 : i32
    return %c0_i32, %arg0 : i32, i32
  }
  func.func @transform_10(%arg0: i32) -> (i32, i32) {
    %c0_i32 = arith.constant 0 : i32
    %c0_i32_0 = arith.constant 0 : i32
    return %c0_i32, %arg0 : i32, i32
  }
}

</mosaic_0001>

<bundles_post_ra>
// kernel: tpu_custom_call.1
= control target key start
LH: loop header
LB: loop body
LE: loop exit
PB: predicated region body
PF: predicated region fallthrough
CT: control target
= control target key end

     0   :  { %16 = vsyncpa [#allocation3], 0  ;;  %vm68_vm0 = vcmask 130048   ;;  %v578_v4 = vmov 0   ;;  %s747_s0 = inlined_call_operand.vmem [shape: f32[32,128], index: 0, kind: input, shape index: {}]   ;;  %s748_s1 = inlined_call_operand.vmem [shape: f32[1,128], index: 1, kind: input, shape index: {}]   ;;  %s749_s2 = inlined_call_operand.vmem [shape: f32[32,16], index: 2, kind: input, shape index: {}]   ;;  %s750_s3 = inlined_call_operand.vmem [shape: f32[32,1], index: 3, kind: input, shape index: {}]   ;;  %s751_s4 = inlined_call_operand.vmem [shape: f32[16,32], index: 4, kind: input, shape index: {}]   ;;  %s752_s5 = inlined_call_operand.vmem [shape: f32[16,1], index: 5, kind: input, shape index: {}]   ;;  %s753_s6 = inlined_call_operand.vmem [shape: f32[16,32], index: 6, kind: input, shape index: {}]   ;;  %s754_s7 = inlined_call_operand.vmem [shape: f32[16,1], index: 7, kind: input, shape index: {}]   ;;  %s755_s8 = inlined_call_operand.vmem [shape: f32[16,1], index: 8, kind: input, shape index: {}]   ;;  %s756_s9 = inlined_call_operand.hbm [shape: f32[32,128], index: 9, kind: output, shape index: {0}]   ;;  %s757_s10 = inlined_call_operand.hbm [shape: f32[1,128], index: 10, kind: output, shape index: {1}]  }
   0x1   :  { %v38_v0 = vld [vmem:[%s747_s0 + $0x10] sm:$0xff]  ;;  %v39_v1 = vld [vmem:[%s747_s0 + $0x18] sm:$0xff]  ;;  %v40_v2 = vld [vmem:[%s749_s2] sm:$0xff]  ;;  %520 = vset.pattern.permute.xlu0 %v578_v4  ;;  %521 = vset.pattern.permute.xlu1 %v578_v4 }
   0x2   :  { %v495_v3 = vpack.c.bf16 %v39_v1, %v38_v0  ;;  %395 = vst [vmem:[#allocation2 + $0x10] sm:$0xff] %v38_v0  ;;  %396 = vst [vmem:[#allocation2 + $0x18] sm:$0xff] %v39_v1  ;;  %467 = vmatprep.mubr.msk.f32.mxu0 %vm68_vm0, %v40_v2  ;;  %v44_v5 = vld [vmem:[%s750_s3] sm:$0xff]  ;;  %v46_v6 = vld [vmem:[%s750_s3 + $0x10] sm:$0xff] }
   0x3   :  { %50 = vperm.xlu0 %520, %v44_v5   ;;  %v41_v7 = vld [vmem:[%s749_s2 + $0x8] sm:$0xff]  ;;  %60 = vperm.xlu1 %521, %v46_v6   ;;  %v42_v9 = vld [vmem:[%s749_s2 + $0x10] sm:$0xff]  ;;  %v47_v10 = vld [vmem:[%s750_s3 + $0x18] sm:$0xff] }
   0x4   :  { %496 = vmatprep.subr.bf16.mxu0 %v495_v3  ;;  %v45_v8 = vld [vmem:[%s750_s3 + $0x8] sm:$0xff] }
   0x5   :  { %498 = vmatpush3.bf16.msra.mxu0 %v495_v3 }
   0x6   :  { %17 = vsyncpa [#allocation5], 0  ;;  %v43_v11 = vld [vmem:[%s749_s2 + $0x18] sm:$0xff]  ;;  %v180_v12 = vld [vmem:[%s752_s5] sm:$0xff]  ;;  %vm192_vm1 = vcmask 261120   ;;  %s579_s30 = smov [#allocation2]  }
   0x7   :  { %55 = vperm.xlu0 %520, %v45_v8   ;;  %65 = vperm.xlu1 %521, %v47_v10   ;;  %v181_v13 = vld [vmem:[%s752_s5 + $0x8] sm:$0xff]  ;;  %v371_v14 = vld [vmem:[%s755_s8] sm:$0xff]  ;;  %s412_s11 = sshll.u32 %s579_s30, 4  ;;  %s580_s14 = smov [#allocation4]   ;;  %s413_s11 = int_to_ptr.vmem [resolvable:$true] %s412_s11 }
   0x8   :  { %468 = vmatmul.mubr.msk.f32.vlgmr.msra.gmra.mrb[0].mxu0 %vm68_vm0, %v41_v7  ;;  %v372_v15 = vld [vmem:[%s755_s8 + $0x8] sm:$0xff]  ;;  %v276_v16 = vld [vmem:[%s754_s7] sm:$0xff]  ;;  %s425_s15 = sshll.u32 %s580_s14, 4  ;;  %p535_p1 = scmp.lt.s32.totalorder %s413_s11, %s413_s11  ;;  %s715_s15 = int_to_ptr.vmem [resolvable:$true] %s425_s15 }
   0x9   :  { %470 = vmatprep.mubr.msk.f32.mxu0 %vm68_vm0, %v42_v9  ;;  %v277_v17 = vld [vmem:[%s754_s7 + $0x8] sm:$0xff]  ;;  %v178_v18 = vld [vmem:[%s751_s4] sm:$0xff] }
   0xa   :  { %v274_v19 = vld [vmem:[%s753_s6] sm:$0xff]  ;;  %481 = vmatprep.mubr.msk.f32.mxu1 %vm192_vm1, %v178_v18  ;;  %v179_v42 = vld [vmem:[%s751_s4 + $0x8] sm:$0xff] }
   0xb   :  { %184 = vperm.xlu0 %520, %v180_v12   ;;  %189 = vperm.xlu1 %521, %v181_v13   ;;  %v275_v43 = vld [vmem:[%s753_s6 + $0x8] sm:$0xff]  ;;  %v36_v5 = vld [vmem:[%s747_s0] sm:$0xff] }
   0xc   :  { %471 = vmatmul.mubr.msk.f32.gmra.mrb[2].mxu0 %vm68_vm0, %v43_v11  ;;  %v37_v3 = vld [vmem:[%s747_s0 + $0x8] sm:$0xff]  ;;  %v397_v11 = vld [vmem:[%s748_s1] sm:$0x1]  ;;  %s530_s0 = scalar_lea.vmem %s413_s11, 512 }
   0xd   :  { %492 = vmatprep.mubr.msk.f32.mxu0 %vm192_vm1, %v274_v19  ;;  %p531_p0 = scmp.ne.s32.totalorder %s413_s11, %s530_s0  ;;  %p536_p2 = scmp.lt.s32.totalorder %s530_s0, %s530_s0 }
   0xf   :  { %375 = vperm.xlu0 %520, %v371_v14   ;;  %380 = vperm.xlu1 %521, %v372_v15   ;;  %p537_p3 = por %p536_p2, %p535_p1 }
  0x11   :  { %p538_p4 = pnand %p537_p3, %p531_p0 }
  0x13   :  { %280 = vperm.xlu0 %520, %v276_v16   ;;  %285 = vperm.xlu1 %521, %v277_v17  }
  0x82   :  { %v51_v20 = vpop.permute.xlu0 %50  ;;  %v61_v21 = vpop.permute.xlu1 %60 }
  0x86   :  { %v56_v22 = vpop.permute.xlu0 %55  ;;  %v66_v28 = vpop.permute.xlu1 %65 }
  0x8a   :  { %v185_v44 = vpop.permute.xlu0 %184  ;;  %v190_v45 = vpop.permute.xlu1 %189 }
  0x8e   :  { %v381_v53 = vpop.permute.xlu1 %380  ;;  %v376_v55 = vpop.permute.xlu0 %375 }
  0x92   :  { %v286_v63 = vpop.permute.xlu1 %285  ;;  %v281_v0 = vpop.permute.xlu0 %280 }
  0xdb   :  { %v469_v23 = vpop.f32.mrb[0].mxu0 }
  0xdc   :  { %v153_v24 = vadd.f32 %v469_v23, %v56_v22  ;;  %v147_v25 = vpop.f32.mrb[1].mxu0 }
  0xdd   :  { %v148_v26 = vadd.f32 %v147_v25, %v51_v20 }
  0xde   :  { %vm167_vm2 = vcmp.ge.f32.partialorder %v153_v24, 0.0  ;;  %v171_v27 = vmul.f32 0.01, %v153_v24 }
  0xdf   :  { %vm166_vm3 = vcmp.ge.f32.partialorder %v148_v26, 0.0  ;;  %v170_v29 = vmul.f32 0.01, %v148_v26  ;;  %v472_v30 = vpop.f32.mrb[2].mxu0 }
  0xe0   :  { %v175_v31 = vsel %vm167_vm2, %v153_v24, %v171_v27  ;;  %v163_v32 = vadd.f32 %v472_v30, %v66_v28  ;;  %v157_v33 = vpop.f32.mrb[3].mxu0 }
  0xe1   :  { %v174_v34 = vsel %vm166_vm3, %v148_v26, %v170_v29  ;;  %v158_v35 = vadd.f32 %v157_v33, %v61_v21 }
  0xe2   :  { %v499_v36 = vpack.c.bf16 %v175_v31, %v174_v34  ;;  %vm169_vm4 = vcmp.ge.f32.partialorder %v163_v32, 0.0  ;;  %v173_v37 = vmul.f32 0.01, %v163_v32 }
  0xe3   :  { %vm168_vm5 = vcmp.ge.f32.partialorder %v158_v35, 0.0  ;;  %v172_v38 = vmul.f32 0.01, %v158_v35 }
  0xe4   :  { %v177_v39 = vsel %vm169_vm4, %v163_v32, %v173_v37  ;;  %500 = vmatprep.subr.bf16.mxu1 %v499_v36  ;;  %508 = vmatprep.subr.bf16.mxu0 %v499_v36 }
  0xe5   :  { %v176_v40 = vsel %vm168_vm5, %v158_v35, %v172_v38  ;;  %502 = vmatpush3.bf16.msra.mxu1 %v499_v36  ;;  %510 = vmatpush3.bf16.msra.mxu0 %v499_v36 }
  0xe6   :  { %v503_v41 = vpack.c.bf16 %v177_v39, %v176_v40 }
  0xe8   :  { %504 = vmatprep.subr.bf16.mxu1 %v503_v41  ;;  %512 = vmatprep.subr.bf16.mxu0 %v503_v41 }
  0xe9   :  { %506 = vmatpush3.bf16.msra.mxu1 %v503_v41  ;;  %514 = vmatpush3.bf16.msra.mxu0 %v503_v41 }
  0xec   :  { %482 = vmatmul.mubr.msk.f32.vlgmr.msra.gmra.mrb[0].mxu1 %vm192_vm1, %v179_v42  ;;  %493 = vmatmul.mubr.msk.f32.vlgmr.msra.gmra.mrb[4].mxu0 %vm192_vm1, %v275_v43 }
 0x1bf   :  { %v483_v46 = vpop.f32.mrb[0].mxu1  ;;  %v494_v47 = vpop.f32.mrb[4].mxu0 }
 0x1c0   :  { %v271_v48 = vadd.f32 %v483_v46, %v190_v45  ;;  %v265_v49 = vpop.f32.mrb[1].mxu1  ;;  %v360_v50 = vpop.f32.mrb[5].mxu0  ;;  %v366_v1 = vadd.f32 %v494_v47, %v286_v63 }
 0x1c1   :  { %v266_v51 = vadd.f32 %v265_v49, %v185_v44  ;;  %v361_v4 = vadd.f32 %v360_v50, %v281_v0 }
 0x1c2   :  { %522 = vtanh.f32 %v271_v48  ;;  %v390_v7 = vadd.f32 %v366_v1, %v37_v3 }
 0x1c3   :  { %524 = vtanh.f32 %v266_v51  ;;  %v389_v10 = vadd.f32 %v361_v4, %v36_v5 }
 0x1cc   :  { %v523_v52 = vpop.eup %522 }
 0x1cd   :  { %v525_v54 = vpop.eup %524  ;;  %v384_v56 = vmul.f32 %v523_v52, %v381_v53 }
 0x1ce   :  { %v383_v57 = vmul.f32 %v525_v54, %v376_v55 }
 0x1cf   :  { %v387_v58 = vmul.f32 1.442695, %v384_v56 }
 0x1d0   :  { %v385_v59 = vmul.f32 1.442695, %v383_v57  ;;  %v398_v60 = vadd.f32 %v384_v56, %v383_v57 }
 0x1d1   :  { %526 = vpow2.f32 %v387_v58 }
 0x1d2   :  { %528 = vpow2.f32 %v385_v59  ;;  %v399_v61 = vrot.slane %v398_v60, 4 }
 0x1d4   :  { %v400_v62 = vadd.f32 %v399_v61, %v398_v60 }
 0x1d6   :  { %v401_v2 = vrot.slane %v400_v62, 2 }
 0x1d8   :  { %v402_v6 = vadd.f32 %v401_v2, %v400_v62 }
 0x1da   :  { %v403_v8 = vrot.slane %v402_v6, 1 }
 0x1db   :  { %v527_v9 = vpop.eup %526 }
 0x1dc   :  { %v529_v12 = vpop.eup %528  ;;  %v392_v13 = vmul.f32 %v527_v9, %v390_v7  ;;  %v404_v14 = vadd.f32 %v403_v8, %v402_v6 }
 0x1dd   :  { %v391_v15 = vmul.f32 %v529_v12, %v389_v10 }
 0x1de   :  { %394 = vst [vmem:[#allocation2 + $0x8] sm:$0xff] %v392_v13  ;;  %v405_v16 = vadd.f32 %v404_v14, %v397_v11 }
 0x1df   :  { %393 = vst [vmem:[#allocation2] sm:$0xff] %v391_v15 }
 0x1e0   :  { %541 = shalt.err (!%p538_p4)
}
 0x1e1   :  { %s542_s3 = scalar_lea.hbm %s756_s9, 512 }
 0x1e2   :  { %p543_p5 = scmp.ne.s32.totalorder %s756_s9, %s542_s3  ;;  %p546_p6 = scmp.lt.u32.totalorder %s542_s3, %s756_s9 }
 0x1e4   :  { %p548_p7 = pnand %p546_p6, %p543_p5 }
 0x1e6   :  { %551 = shalt.err (!%p548_p7)
}
 0x1e7   :  { %s581_s20 = smov 128   ;;  %s582_s21 = smov 8   ;;  %406 = vst [vmem:[#allocation4] sm:$0x1] %v405_v16 }
 0x1e8   :  { %418 = dma.vmem_to_hbm [thread:$0]  %s413_s11, 512, %s756_s9, [#allocation3], %s581_s20, %s581_s20, %s582_s21  }
 0x1e9   :  { %s552_s23 = scalar_lea.vmem %s715_s15, 16  ;;  %s556_s24 = scalar_lea.vmem %s715_s15, 32 }
 0x1ea   :  { %p553_p8 = scmp.ne.s32.totalorder %s715_s15, %s552_s23  ;;  %p557_p9 = scmp.lt.s32.totalorder %s715_s15, %s715_s15 }
 0x1eb   :  { %p558_p10 = scmp.lt.s32.totalorder %s556_s24, %s552_s23 }
 0x1ed   :  { %p559_p11 = por %p558_p10, %p557_p9 }
 0x1ef   :  { %p560_p12 = pnand %p559_p11, %p553_p8 }
 0x1f1   :  { %563 = shalt.err (!%p560_p12)
}
 0x1f2   :  { %s564_s8 = scalar_lea.hbm %s757_s10, 16 }
 0x1f3   :  { %p565_p13 = scmp.ne.s32.totalorder %s757_s10, %s564_s8  ;;  %p568_p0 = scmp.lt.u32.totalorder %s564_s8, %s757_s10 }
 0x1f5   :  { %p570_p1 = pnand %p568_p0, %p565_p13 }
 0x1f7   :  { %573 = shalt.err (!%p570_p1)
}
 0x1f8   :  { %428 = dma.vmem_to_hbm [thread:$0]  %s715_s15, 16, %s757_s10, [#allocation5]  }
 0x1f9   :  { %574 = dma.done.wait [#allocation3], 512  }
 0x1fa   :  { %575 = vsyncadd [#allocation3], 4294966784 }
 0x1fb   :  { %576 = dma.done.wait [#allocation5], 16  }
 0x1fc   :  { %577 = vsyncadd [#allocation5], 4294967280 }
 0x1fd   :  { %435 = vsyncpa [#allocation3], 1 }
 0x1fe   :  { %436 = vsyncpa [#allocation5], 1 }

</bundles_post_ra>
